<compile_context>
chip_gen: v5e
topology: v5e:2x2
jax: 0.10.0
libtpu: 0.0.40
codegen_flags: <defaults>
</compile_context>

<pallas_src>
import functools

import jax
import jax.numpy as jnp
from jax.experimental import pallas as pl
from jax.experimental.pallas import tpu as pltpu


def _round_up(x: int, m: int) -> int:
    return (x + m - 1) // m * m


@functools.lru_cache(maxsize=None)
def _tpu_config():
    """Generation-aware tiling defaults (queried once per process)."""
    vmem_bytes = 64 * 1024 * 1024  # conservative fallback
    try:
        vmem_bytes = pltpu.get_tpu_info().vmem_capacity_bytes
    except Exception:
        pass
    if vmem_bytes >= 100 * 1024 * 1024:
        # v5e / v6e: 128 MiB VMEM -> big tiles, generous scoped-VMEM limit.
        return {"tm": 256, "tn": 512, "tk": 512, "vmem_limit": 96 * 1024 * 1024}
    # v7x: 64 MiB VMEM per TensorCore -> same (small-footprint) tiles but keep
    # headroom so the double-buffered pipeline never spills or serializes.
    return {"tm": 256, "tn": 512, "tk": 512, "vmem_limit": 48 * 1024 * 1024}


def _linear_kernel_fast(x_ref, w_ref, b_ref, o_ref):
    """Single-K-step path: whole contraction in one MXU call, no scratch."""
    acc = jnp.dot(x_ref[...], w_ref[...], preferred_element_type=jnp.float32)
    o_ref[...] = (acc + b_ref[...].astype(jnp.float32)).astype(o_ref.dtype)


def _linear_kernel_acc(x_ref, w_ref, b_ref, o_ref, acc_ref):
    """Tiled-K path: f32 VMEM accumulator, K innermost ('arbitrary') axis."""
    k = pl.program_id(2)

    @pl.when(k == 0)
    def _init():
        acc_ref[...] = jnp.zeros_like(acc_ref)

    acc_ref[...] += jnp.dot(
        x_ref[...], w_ref[...], preferred_element_type=jnp.float32
    )

    @pl.when(k == pl.num_programs(2) - 1)
    def _finalize():
        o_ref[...] = (acc_ref[...] + b_ref[...].astype(jnp.float32)).astype(
            o_ref.dtype
        )


def linear_pallas(x, w_p, b_p, *, out_features):
    """x: (B, IN); w_p: (Kp, Np) pre-transposed/padded/bf16; b_p: (1, Np) f32.

    Returns (B, out_features) in x.dtype.
    """
    M, K = x.shape
    Kp, Np = w_p.shape
    cfg = _tpu_config()
    compute_dtype = w_p.dtype

    # Cast activations to the MXU compute dtype (accumulation stays f32).
    xk = x if x.dtype == compute_dtype else x.astype(compute_dtype)
    # K zero-padding is only needed when the weight was K-padded at init
    # (multi-step reduction); padded K columns are zeros -> no contribution.
    if Kp != K:
        xk = jnp.pad(xk, ((0, 0), (0, Kp - K)))

    # Tile sizes: full-extent blocks for small dims, big aligned tiles otherwise.
    tk = Kp if Kp <= cfg["tk"] else cfg["tk"]
    tn = Np if Np <= cfg["tn"] else cfg["tn"]
    tm = M if M <= cfg["tm"] else cfg["tm"]
    assert Kp % tk == 0 and Np % tn == 0  # guaranteed by init_linear_params

    grid_m = pl.cdiv(M, tm)  # ragged M edge block (if any) is masked by Pallas
    grid_n = Np // tn
    grid_k = Kp // tk

    out_shape = jax.ShapeDtypeStruct((M, Np), x.dtype)

    if grid_k == 1:
        out_padded = pl.pallas_call(
            _linear_kernel_fast,
            out_shape=out_shape,
            grid_spec=pltpu.PrefetchScalarGridSpec(
                num_scalar_prefetch=0,
                grid=(grid_m, grid_n),
                in_specs=[
                    pl.BlockSpec((tm, Kp), lambda i, j: (i, 0)),  # x
                    pl.BlockSpec((Kp, tn), lambda i, j: (0, j)),  # weight
                    pl.BlockSpec((1, tn), lambda i, j: (0, j)),   # bias
                ],
                out_specs=pl.BlockSpec((tm, tn), lambda i, j: (i, j)),
            ),
            compiler_params=pltpu.CompilerParams(
                dimension_semantics=("parallel", "parallel"),
                vmem_limit_bytes=cfg["vmem_limit"],
            ),
        )(xk, w_p, b_p)
    else:
        out_padded = pl.pallas_call(
            _linear_kernel_acc,
            out_shape=out_shape,
            grid_spec=pltpu.PrefetchScalarGridSpec(
                num_scalar_prefetch=0,
                grid=(grid_m, grid_n, grid_k),
                in_specs=[
                    pl.BlockSpec((tm, tk), lambda i, j, k: (i, k)),  # x
                    pl.BlockSpec((tk, tn), lambda i, j, k: (k, j)),  # weight
                    pl.BlockSpec((1, tn), lambda i, j, k: (0, j)),   # bias
                ],
                out_specs=pl.BlockSpec((tm, tn), lambda i, j, k: (i, j)),
                scratch_shapes=[pltpu.VMEM((tm, tn), jnp.float32)],
            ),
            compiler_params=pltpu.CompilerParams(
                dimension_semantics=("parallel", "parallel", "arbitrary"),
                vmem_limit_bytes=cfg["vmem_limit"],
            ),
        )(xk, w_p, b_p)

    # Slice the lane-dense padded output back to the logical OUT columns.
    if Np != out_features:
        out_padded = out_padded[:, :out_features]
    return out_padded


def init_linear_params(key, input_size, output_size, dtype=jnp.float32,
                       compute_dtype=jnp.bfloat16):
    """nn.Linear default init (U(-1/sqrt(in), 1/sqrt(in))) + one-time weight prep.

    Returns:
      w   : (OUT, IN) reference-layout weight (like torch nn.Linear.weight)
      b   : (OUT,)    reference bias
      w_p : (Kp, Np)  pre-transposed, tile-padded, compute-dtype weight
      b_p : (1,  Np)  tile-padded f32 bias (added after f32 accumulation)
    """
    kw, kb = jax.random.split(key)
    bound = 1.0 / (input_size ** 0.5)
    w = jax.random.uniform(kw, (output_size, input_size), dtype, -bound, bound)
    b = jax.random.uniform(kb, (output_size,), dtype, -bound, bound)

    cfg = _tpu_config()
    K, N = input_size, output_size
    # N (lane) axis: pad once to a lane-dense multiple of 128 / of the N tile.
    Np = _round_up(N, 128)
    if Np > cfg["tn"]:
        Np = _round_up(N, cfg["tn"])
    # K (reduction) axis: pad only when K must be tiled (multi-step reduction);
    # otherwise keep it exact and let the single-step kernel use the full dim.
    Kp = K if _round_up(K, 128) <= cfg["tk"] else _round_up(K, cfg["tk"])

    w_t = jnp.asarray(w.T)  # (IN, OUT), hoisted out of the call path
    w_p = jnp.pad(w_t, ((0, Kp - K), (0, Np - N))).astype(compute_dtype)
    b_p = jnp.pad(b.astype(jnp.float32).reshape(1, N), ((0, 0), (0, Np - N)))
    return w, b, w_p, b_p


if __name__ == "__main__":
    key = jax.random.PRNGKey(0)
    k_x, k_p = jax.random.split(key)

    batch = 8
    input_size = 32
    output_size = 16

    x = jax.random.normal(k_x, (batch, input_size), jnp.float32)
    w, b, w_p, b_p = init_linear_params(k_p, input_size, output_size)

    fwd = jax.jit(functools.partial(linear_pallas, out_features=output_size))
    out = fwd(x, w_p, b_p)
    jax.block_until_ready(out)

    # Reference check against plain JAX (same math as torch nn.Linear forward).
    ref = x @ w.T + b
    assert out.shape == (batch, output_size)
    # bf16 MXU operands with f32 accumulation -> looser tolerance vs f32 ref.
    assert jnp.allclose(out, ref, atol=2e-2, rtol=2e-2), float(
        jnp.max(jnp.abs(out - ref))
    )

    print("KERNEL_OK")
</pallas_src>

<mosaic_0001>
module attributes {stable_mosaic.version = 11 : i64} {
  func.func @_linear_kernel_fast(%arg0: i32, %arg1: i32, %arg2: memref<8x32xbf16, #tpu.memory_space<vmem>>, %arg3: memref<32x128xbf16, #tpu.memory_space<vmem>>, %arg4: memref<1x128xf32, #tpu.memory_space<vmem>>, %arg5: memref<8x128xf32, #tpu.memory_space<vmem>>) attributes {dimension_semantics = [#tpu.dimension_semantics<parallel>, #tpu.dimension_semantics<parallel>], iteration_bounds = array<i64: 1, 1>, scalar_prefetch = 0 : i64, scratch_operands = 0 : i64, tpu.core_type = #tpu.core_type<tc>, window_params = [{transform_indices = @transform_0, window_bounds = array<i64: 8, 32>}, {transform_indices = @transform_1, window_bounds = array<i64: 32, 128>}, {transform_indices = @transform_2, window_bounds = array<i64: 1, 128>}, {transform_indices = @transform_3, window_bounds = array<i64: 8, 128>}]} {
    %c0 = arith.constant 0 : index
    %c0_0 = arith.constant 0 : index
    %0 = vector.load %arg2[%c0, %c0_0] : memref<8x32xbf16, #tpu.memory_space<vmem>>, vector<8x32xbf16>
    %c0_1 = arith.constant 0 : index
    %c0_2 = arith.constant 0 : index
    %1 = vector.load %arg3[%c0_1, %c0_2] : memref<32x128xbf16, #tpu.memory_space<vmem>>, vector<32x128xbf16>
    %cst = arith.constant dense<0.000000e+00> : vector<8x128xf32>
    %2 = tpu.matmul %0, %1, %cst {dimension_numbers = #tpu.dot_dimension_numbers<[1], [0], [0], [1], [0, 0, 1, 1], [], []>} : vector<8x32xbf16>, vector<32x128xbf16>, vector<8x128xf32> -> vector<8x128xf32>
    %c0_3 = arith.constant 0 : index
    %c0_4 = arith.constant 0 : index
    %3 = vector.load %arg4[%c0_3, %c0_4] : memref<1x128xf32, #tpu.memory_space<vmem>>, vector<1x128xf32>
    %4 = vector.broadcast %3 : vector<1x128xf32> to vector<8x128xf32>
    %5 = arith.addf %2, %4 : vector<8x128xf32>
    %c0_5 = arith.constant 0 : index
    %c0_6 = arith.constant 0 : index
    %6 = vector.load %arg5[%c0_5, %c0_6] : memref<8x128xf32, #tpu.memory_space<vmem>>, vector<8x128xf32>
    tpu.vector_store %arg5[%c0_5, %c0_6], %5 {strides = array<i32>} : memref<8x128xf32, #tpu.memory_space<vmem>>, vector<8x128xf32>,
    return
  }
  func.func @transform_0(%arg0: i32, %arg1: i32) -> (i32, i32) {
    %c0_i32 = arith.constant 0 : i32
    %c0_i32_0 = arith.constant 0 : i32
    return %arg0, %c0_i32 : i32, i32
  }
  func.func @transform_1(%arg0: i32, %arg1: i32) -> (i32, i32) {
    %c0_i32 = arith.constant 0 : i32
    %c0_i32_0 = arith.constant 0 : i32
    return %c0_i32, %arg1 : i32, i32
  }
  func.func @transform_2(%arg0: i32, %arg1: i32) -> (i32, i32) {
    %c0_i32 = arith.constant 0 : i32
    %c0_i32_0 = arith.constant 0 : i32
    return %c0_i32, %arg1 : i32, i32
  }
  func.func @transform_3(%arg0: i32, %arg1: i32) -> (i32, i32) {
    %c0_i32 = arith.constant 0 : i32
    return %arg0, %arg1 : i32, i32
  }
}

</mosaic_0001>

<bundles_post_ra>
// kernel: linear_pallas.1
= control target key start
LH: loop header
LB: loop body
LE: loop exit
PB: predicated region body
PF: predicated region fallthrough
CT: control target
= control target key end

     0   :  { %8 = vsyncpa [#allocation3], 0  ;;  %s192_s0 = inlined_call_operand.vmem [shape: bf16[8,32], index: 0, kind: input, shape index: {}]   ;;  %s193_s1 = inlined_call_operand.hbm [shape: bf16[32,128], index: 1, kind: input, shape index: {}]   ;;  %s194_s2 = inlined_call_operand.vmem [shape: f32[1,128], index: 2, kind: input, shape index: {}]   ;;  %s195_s3 = inlined_call_operand.hbm [shape: f32[8,128], index: 3, kind: output, shape index: {}]  }
   0x1   :  { %9 = vsyncpa [#allocation4], 0  ;;  %s16_s14 = sshll.u32 %s193_s1, 4  ;;  %s156_s15 = smov [#allocation2]   ;;  %s17_s14 = int_to_ptr.hbm [resolvable:$true] %s16_s14 }
   0x2   :  { %s18_s16 = sshll.u32 %s156_s15, 4  ;;  %s157_s17 = smov 64   ;;  %s19_s16 = int_to_ptr.vmem [resolvable:$true] %s18_s16 }
   0x3   :  { %s158_s18 = smov 4  }
   0x4   :  { %24 = dma.hbm_to_vmem [thread:$0]  %s17_s14, 256, %s19_s16, [#allocation3], %s157_s17, %s157_s17, %s158_s18  }
   0x5   :  { %152 = dma.done.wait [#allocation3], 256  }
   0x6   :  { %153 = vsyncadd [#allocation3], 4294967040  ;;  %v98_v0 = vld [vmem:[#allocation2 + $0x8] sm:$0xff]  ;;  %v97_v1 = vld [vmem:[#allocation2] sm:$0xff]  ;;  %vm53_vm0 = vcmask 261120   ;;  %s159_s22 = smov [#allocation5]  }
   0x7   :  { %63 = vmatpush.bf16.msra.mxu0 %v98_v0  ;;  %v32_v2 = vld [vmem:[%s192_s0] sm:$0xf]  ;;  %s76_s23 = sshll.u32 %s159_s22, 4  ;;  %s78_s26 = sshll.u32 %s195_s3, 4  ;;  %s77_s23 = int_to_ptr.vmem [resolvable:$true] %s76_s23  ;;  %s79_s26 = int_to_ptr.hbm [resolvable:$true] %s78_s26 }
   0x8   :  { %v103_v3 = vld [vmem:[%s194_s2] ss:$0 sm:$0xff] }
   0xb   :  { %64 = vmatpush.bf16.msra.mxu0 %v97_v1 }
   0xe   :  { %96 = vmatmul.msk.bf16.vlgmr.msra.gmra.mxu0 %vm53_vm0, %v32_v2 }
  0x8b   :  { %v66_v4 = vpop.f32.mrf.mxu0 }
  0x8c   :  { %v67_v5 = vadd.f32 %v103_v3, %v66_v4 }
  0x8e   :  { %70 = vst [vmem:[#allocation5] sm:$0xff] %v67_v5 }
  0x8f   :  { %81 = dma.vmem_to_hbm [thread:$0]  %s77_s23, 128, %s79_s26, [#allocation4]  }
  0x93   :  { %v68_v6 = vpop.f32.mrf.mxu0 }
  0x94   :  { %154 = dma.done.wait [#allocation4], 128  }
  0x95   :  { %155 = vsyncadd [#allocation4], 4294967168 }
  0x96   :  { %86 = vsyncpa [#allocation3], 1 }
  0x97   :  { %87 = vsyncpa [#allocation4], 1 }

</bundles_post_ra>
